<compile_context>
chip_gen: v5e
topology: v5e:2x2
jax: 0.10.0
libtpu: 0.0.40
codegen_flags: <defaults>
</compile_context>

<pallas_src>
import jax
import jax.numpy as jnp
import numpy as np
from jax.experimental import pallas as pl
from jax.experimental.pallas import tpu as pltpu

_VMEM_LIMIT = 64 * 1024 * 1024


def _round_up(x, m):
    return ((x + m - 1) // m) * m


# ----------------------------------------------------------------------------
# Generic Pallas linear kernel (generator head)
# ----------------------------------------------------------------------------
def _linear_kernel(x_ref, w_ref, b_ref, o_ref):
    o_ref[...] = (jnp.dot(x_ref[...], w_ref[...],
                          preferred_element_type=jnp.float32)
                  + b_ref[...]).astype(o_ref.dtype)


def pallas_linear(x, w, b=None, *, block_rows=512):
    """y = x @ w (+ b). Activations cast to bf16 on the host (halves input DMA of
    this mem-bound kernel); bf16 MXU operands, f32 accumulation. Rows tiled in
    multiples of 8 ("parallel" grid axis); output lane dim zero-padded to 128 so
    stores are unmasked; padding is sliced off on return."""
    N, K = x.shape
    M = w.shape[1]
    Mp = _round_up(M, 128)
    rows = min(block_rows, _round_up(N, 8))
    Np = _round_up(N, rows)

    x = x.astype(jnp.bfloat16)
    x_p = x if Np == N else jnp.zeros((Np, K), jnp.bfloat16).at[:N].set(x)
    w_p = jnp.zeros((K, Mp), jnp.bfloat16).at[:, :M].set(w.astype(jnp.bfloat16))
    b_arr = (jnp.zeros((1, M), jnp.float32) if b is None
             else b.astype(jnp.float32).reshape(1, M))
    b_p = jnp.zeros((1, Mp), jnp.float32).at[:, :M].set(b_arr)

    out = pl.pallas_call(
        _linear_kernel,
        out_shape=jax.ShapeDtypeStruct((Np, Mp), jnp.float32),
        grid=(Np // rows,),
        in_specs=[
            pl.BlockSpec((rows, K), lambda i: (i, 0)),
            pl.BlockSpec((K, Mp), lambda i: (0, 0)),
            pl.BlockSpec((1, Mp), lambda i: (0, 0)),
        ],
        out_specs=pl.BlockSpec((rows, Mp), lambda i: (i, 0)),
        compiler_params=pltpu.CompilerParams(
            dimension_semantics=("parallel",),
            vmem_limit_bytes=_VMEM_LIMIT),
    )(x_p, w_p, b_p)
    return out[:N, :M]


# ----------------------------------------------------------------------------
# Hoisted feature projections: one pallas_call, TWO bf16 outputs (fp, fq)
# ----------------------------------------------------------------------------
def _feat_proj_kernel(x_ref, wp_ref, wq_ref, fp_ref, fq_ref):
    x = x_ref[...]                                              # (rows, C) bf16
    fp_ref[...] = jnp.dot(x, wp_ref[...],
                          preferred_element_type=jnp.float32).astype(fp_ref.dtype)
    fq_ref[...] = jnp.dot(x, wq_ref[...],
                          preferred_element_type=jnp.float32).astype(fq_ref.dtype)


def feat_projection(feats_bt, w_i2h, w_ihc, *, block_rows=512):
    """fp = feats @ w_i2h (i2h), fq = feats @ w_ih[:C]. Two separate bf16 outputs
    from one kernel: the x tile is DMA'd/loaded once and reused for both dots, and
    the wrapper never round-trips a fused f_all tensor through HBM."""
    B, T, C = feats_bt.shape
    H = w_i2h.shape[1]
    N = B * T
    rows = min(block_rows, _round_up(N, 8))
    Np = _round_up(N, rows)

    x = feats_bt.reshape(N, C).astype(jnp.bfloat16)
    x_p = x if Np == N else jnp.zeros((Np, C), jnp.bfloat16).at[:N].set(x)
    wp = w_i2h.astype(jnp.bfloat16)
    wq = w_ihc.astype(jnp.bfloat16)

    fp, fq = pl.pallas_call(
        _feat_proj_kernel,
        out_shape=(jax.ShapeDtypeStruct((Np, H), jnp.bfloat16),
                   jax.ShapeDtypeStruct((Np, 3 * H), jnp.bfloat16)),
        grid=(Np // rows,),
        in_specs=[
            pl.BlockSpec((rows, C), lambda i: (i, 0)),
            pl.BlockSpec((C, H), lambda i: (0, 0)),
            pl.BlockSpec((C, 3 * H), lambda i: (0, 0)),
        ],
        out_specs=(pl.BlockSpec((rows, H), lambda i: (i, 0)),
                   pl.BlockSpec((rows, 3 * H), lambda i: (i, 0))),
        compiler_params=pltpu.CompilerParams(
            dimension_semantics=("parallel",),
            vmem_limit_bytes=_VMEM_LIMIT),
    )(x_p, wp, wq)
    return fp[:N].reshape(B, T, H), fq[:N].reshape(B, T, 3 * H)


# ----------------------------------------------------------------------------
# Recurrent attention kernel: grid over decoding steps S ("arbitrary" = sequential)
# ----------------------------------------------------------------------------
def _attention_step_kernel(fp_hbm, fq_hbm, emb_ref, w_ihe_ref, b_ih_ref,
                           w_score_ref, w_hcat_ref, b_hcat_ref,
                           out_ref, fp_vmem, fq_vmem, h_ref, dma_sem):
    i = pl.program_id(0)
    B, T, H = fp_vmem.shape

    # Step 0: bring the step-invariant (hoisted) projections into VMEM ONCE,
    # single-buffered; zero the hidden state. Scratch persists across grid steps.
    @pl.when(i == 0)
    def _():
        cp_fp = pltpu.make_async_copy(fp_hbm, fp_vmem, dma_sem.at[0])
        cp_fq = pltpu.make_async_copy(fq_hbm, fq_vmem, dma_sem.at[1])
        cp_fp.start()
        cp_fq.start()
        cp_fp.wait()
        cp_fq.wait()
        h_ref[...] = jnp.zeros_like(h_ref)

    hidden = h_ref[...]                                          # (B, H) f32

    # Single fused per-step hidden matmul: [h2h | GRU W_hh] (+ fused biases).
    # TODO(synk): on v5e/v6e hold w_hcat in MXU weight regs across steps via
    # pltpu.matmul_push_rhs / matmul_acc_lhs / matmul_pop (re-verify on v7x's MRB).
    hh = jnp.dot(hidden.astype(jnp.bfloat16), w_hcat_ref[...],
                 preferred_element_type=jnp.float32) + b_hcat_ref[...]   # (B, 4H)
    hp = hh[:, :H]                    # h2h(hidden) + b_h2h
    gh = hh[:, H:]                    # hidden @ W_hh + b_hh   (gate order r|z|n)

    # Attention scores, lane-dense over T; softmax along the lane axis.
    fp = fp_vmem[...].astype(jnp.float32)                        # (B, T, H)
    s = jnp.tanh(fp + hp[:, None, :])                            # (B, T, H)
    e = jnp.sum(s * w_score_ref[...][None, :, :], axis=-1)       # (B, T)
    e = e - jnp.max(e, axis=-1, keepdims=True)
    p = jnp.exp(e)
    alpha = p * pl.reciprocal(jnp.sum(p, axis=-1, keepdims=True), approx=True)

    # Context folded through the (linear) GRU input projection, on the MXU:
    #   ctx_proj[b] = sum_t alpha[b,t] * (feats @ W_ih[:C])[b,t,:]
    ctx_proj = jnp.einsum(
        "bqt,bth->bqh", alpha.astype(jnp.bfloat16)[:, None, :], fq_vmem[...],
        preferred_element_type=jnp.float32)[:, 0, :]             # (B, 3H)

    # Per-step embedding projection (folded in; no separate gxe pallas_call).
    gxe = jnp.dot(emb_ref[0], w_ihe_ref[...],
                  preferred_element_type=jnp.float32) + b_ih_ref[...]    # (B, 3H)
    gx = ctx_proj + gxe

    # PyTorch GRUCell, gate order r|z|n.
    r = jax.nn.sigmoid(gx[:, :H] + gh[:, :H])
    z = jax.nn.sigmoid(gx[:, H:2 * H] + gh[:, H:2 * H])
    n = jnp.tanh(gx[:, 2 * H:] + r * gh[:, 2 * H:])
    h_new = (1.0 - z) * n + z * hidden

    h_ref[...] = h_new
    out_ref[0] = h_new.astype(out_ref.dtype)


def run_attention_recurrence(fp, fq, emb_steps, w_ihe, b_ih, w_score, w_hcat, b_hcat):
    B, T, H = fp.shape
    S, _, E = emb_steps.shape
    # TODO(synk): on v7x (2 TensorCores) add a leading "parallel" grid axis over the
    # batch (the recurrence is independent per batch row) for ~2x and half per-core
    # fp/fq residency.
    # TODO(synk): if production H stays < 128, repack the H axis lane-dense
    # (e.g. (B, T/4, 4H)) for the tanh/score path and stage output writes through a
    # 128-lane-wide slab.
    return pl.pallas_call(
        _attention_step_kernel,
        out_shape=jax.ShapeDtypeStruct((S, B, H), jnp.bfloat16),
        grid=(S,),
        in_specs=[
            pl.BlockSpec(memory_space=pl.ANY),                    # fp (HBM, DMA'd once)
            pl.BlockSpec(memory_space=pl.ANY),                    # fq (HBM, DMA'd once)
            pl.BlockSpec((1, B, E), lambda i: (i, 0, 0)),          # emb, streamed per step
            pl.BlockSpec((E, 3 * H), lambda i: (0, 0)),            # W_ih[C:]
            pl.BlockSpec((1, 3 * H), lambda i: (0, 0)),            # b_ih
            pl.BlockSpec((1, H), lambda i: (0, 0)),                # score weight
            pl.BlockSpec((H, 4 * H), lambda i: (0, 0)),            # [W_h2h | W_hh]
            pl.BlockSpec((1, 4 * H), lambda i: (0, 0)),            # [b_h2h | b_hh]
        ],
        out_specs=pl.BlockSpec((1, B, H), lambda i: (i, 0, 0)),    # streamed write-back
        scratch_shapes=[
            pltpu.VMEM((B, T, H), jnp.bfloat16),        # fp resident, single-buffered
            pltpu.VMEM((B, T, 3 * H), jnp.bfloat16),    # fq resident, single-buffered
            pltpu.VMEM((B, H), jnp.float32),            # hidden-state carry
            pltpu.SemaphoreType.DMA((2,)),
        ],
        compiler_params=pltpu.CompilerParams(
            dimension_semantics=("arbitrary",),
            vmem_limit_bytes=_VMEM_LIMIT),
    )(fp, fq, emb_steps, w_ihe, b_ih, w_score, w_hcat, b_hcat)


# ----------------------------------------------------------------------------
# Forward wrapper (training branch, test=False)
# ----------------------------------------------------------------------------
def attention_forward(feats, text_length, text, params):
    """Returns {'result': probs} with probs of shape (num_labels, num_classes)."""
    nT, nB, nC = feats.shape
    H = params["w_h2h"].shape[0]
    lengths = [int(l) for l in np.asarray(text_length)]
    assert nB == len(lengths)
    num_steps = max(lengths)

    # targets[i][1:1+len_i] = text_chunk_i + 1; row 0 stays 0 (GO token) — host glue,
    # matches the PyTorch host loop.
    text_np = np.asarray(text)
    targets = np.zeros((nB, num_steps + 1), dtype=np.int32)
    start = 0
    for i, L in enumerate(lengths):
        targets[i, 1:1 + L] = text_np[start:start + L] + 1
        start += L
    targets = targets.T                                          # (num_steps+1, nB)

    emb_steps = params["char_embeddings"][jnp.asarray(targets[:num_steps])]  # (S, B, E)
    emb_steps = emb_steps.astype(jnp.bfloat16)

    # (T, B, C) -> (B, T, C): lane-dense score/softmax layout inside the kernel.
    feats_bt = jnp.transpose(feats, (1, 0, 2))

    # Hoisted, step-invariant projections (one Pallas call, two bf16 outputs):
    #   fp = i2h(feats)          (B, T, H)
    #   fq = feats @ W_ih[:C]    (B, T, 3H)  (linear, so the attention-weighted sum
    #                                         can be applied after the projection)
    w_ihc = params["w_ih"][:nC]                                  # (C, 3H)
    w_ihe = params["w_ih"][nC:].astype(jnp.bfloat16)             # (E, 3H)
    fp, fq = feat_projection(feats_bt, params["w_i2h"], w_ihc)

    # Fused per-step hidden projection weights: [h2h | GRU W_hh], bf16 once.
    w_hcat = jnp.concatenate([params["w_h2h"], params["w_hh"]], axis=1).astype(jnp.bfloat16)
    b_hcat = jnp.concatenate([params["b_h2h"], params["b_hh"]], axis=1).astype(jnp.float32)

    output_hiddens = run_attention_recurrence(
        fp, fq, emb_steps, w_ihe, params["b_ih"].astype(jnp.float32),
        params["w_score"].astype(jnp.float32), w_hcat, b_hcat)   # (S, B, H) bf16

    # Ragged repack (host glue, matches the PyTorch loop).
    new_hiddens = jnp.concatenate(
        [output_hiddens[:L, b, :] for b, L in enumerate(lengths)], axis=0)

    probs = pallas_linear(new_hiddens, params["w_gen"], params["b_gen"])
    # TODO(synk): test=True greedy-decode branch not implemented (training path only).
    return {"result": probs}


# ----------------------------------------------------------------------------
# Pure-JAX f32 reference (for sanity checking the Pallas kernels)
# ----------------------------------------------------------------------------
def attention_forward_ref(feats, text_length, text, params):
    nT, nB, nC = feats.shape
    H = params["w_h2h"].shape[0]
    lengths = [int(l) for l in np.asarray(text_length)]
    num_steps = max(lengths)
    text_np = np.asarray(text)
    targets = np.zeros((nB, num_steps + 1), dtype=np.int32)
    start = 0
    for i, L in enumerate(lengths):
        targets[i, 1:1 + L] = text_np[start:start + L] + 1
        start += L
    targets = targets.T

    hidden = jnp.zeros((nB, H), jnp.float32)
    outs = []
    for i in range(num_steps):
        emb = params["char_embeddings"][jnp.asarray(targets[i])]
        fp = (feats.reshape(-1, nC) @ params["w_i2h"]).reshape(nT, nB, H)
        hp = hidden @ params["w_h2h"] + params["b_h2h"]
        e = jnp.sum(jnp.tanh(fp + hp[None]) * params["w_score"][None], axis=-1)
        alpha = jax.nn.softmax(e, axis=0)
        ctx = jnp.sum(feats * alpha[:, :, None], axis=0)
        x = jnp.concatenate([ctx, emb], axis=1)
        gx = x @ params["w_ih"] + params["b_ih"]
        gh = hidden @ params["w_hh"] + params["b_hh"]
        r = jax.nn.sigmoid(gx[:, :H] + gh[:, :H])
        z = jax.nn.sigmoid(gx[:, H:2 * H] + gh[:, H:2 * H])
        n = jnp.tanh(gx[:, 2 * H:] + r * gh[:, 2 * H:])
        hidden = (1.0 - z) * n + z * hidden
        outs.append(hidden)
    output_hiddens = jnp.stack(outs, axis=0)
    new_hiddens = jnp.concatenate(
        [output_hiddens[:L, b, :] for b, L in enumerate(lengths)], axis=0)
    return new_hiddens @ params["w_gen"] + params["b_gen"]


# ----------------------------------------------------------------------------
if __name__ == "__main__":
    # Small shapes consistent with the module.
    nT, nB = 8, 2                       # feats: (T, B, C)
    input_size = 32                     # nC
    hidden_size = 32
    num_embeddings = 16
    num_classes = 10

    key = jax.random.PRNGKey(0)
    ks = jax.random.split(key, 12)

    feats = jax.random.normal(ks[0], (nT, nB, input_size), jnp.float32)
    text_length = np.array([5, 3], dtype=np.int32)
    text = np.array(np.arange(int(text_length.sum())) % num_classes, dtype=np.int32)

    sc = 0.1
    params = {
        "w_i2h": sc * jax.random.normal(ks[1], (input_size, hidden_size), jnp.float32),
        "w_h2h": sc * jax.random.normal(ks[2], (hidden_size, hidden_size), jnp.float32),
        "b_h2h": sc * jax.random.normal(ks[3], (1, hidden_size), jnp.float32),
        "w_score": sc * jax.random.normal(ks[4], (1, hidden_size), jnp.float32),
        # GRUCell weights stored as (in, 3H) / (H, 3H), gate order r|z|n (PyTorch).
        "w_ih": sc * jax.random.normal(ks[5], (input_size + num_embeddings, 3 * hidden_size), jnp.float32),
        "b_ih": sc * jax.random.normal(ks[6], (1, 3 * hidden_size), jnp.float32),
        "w_hh": sc * jax.random.normal(ks[7], (hidden_size, 3 * hidden_size), jnp.float32),
        "b_hh": sc * jax.random.normal(ks[8], (1, 3 * hidden_size), jnp.float32),
        "char_embeddings": jax.random.normal(ks[9], (num_classes + 1, num_embeddings), jnp.float32),
        "w_gen": sc * jax.random.normal(ks[10], (hidden_size, num_classes), jnp.float32),
        "b_gen": sc * jax.random.normal(ks[11], (1, num_classes), jnp.float32),
    }

    out = attention_forward(feats, text_length, text, params)
    probs = jax.block_until_ready(out["result"])

    ref = jax.block_until_ready(attention_forward_ref(feats, text_length, text, params))
    # bf16 MXU operands / bf16 residents + approx reciprocal vs. pure-f32 reference.
    np.testing.assert_allclose(np.asarray(probs), np.asarray(ref), rtol=5e-2, atol=5e-2)

    print("KERNEL_OK")
</pallas_src>

<mosaic_0001>
module attributes {stable_mosaic.version = 11 : i64} {
  func.func @_feat_proj_kernel(%arg0: i32, %arg1: memref<16x32xbf16, #tpu.memory_space<vmem>>, %arg2: memref<32x32xbf16, #tpu.memory_space<vmem>>, %arg3: memref<32x96xbf16, #tpu.memory_space<vmem>>, %arg4: memref<16x32xbf16, #tpu.memory_space<vmem>>, %arg5: memref<16x96xbf16, #tpu.memory_space<vmem>>) attributes {dimension_semantics = [#tpu.dimension_semantics<parallel>], iteration_bounds = array<i64: 1>, scalar_prefetch = 0 : i64, scratch_operands = 0 : i64, tpu.core_type = #tpu.core_type<tc>, window_params = [{transform_indices = @transform_0, window_bounds = array<i64: 16, 32>}, {pipeline_mode = #tpu.pipeline_mode<synchronous>, transform_indices = @transform_1, window_bounds = array<i64: 32, 32>}, {pipeline_mode = #tpu.pipeline_mode<synchronous>, transform_indices = @transform_2, window_bounds = array<i64: 32, 96>}, {transform_indices = @transform_3, window_bounds = array<i64: 16, 32>}, {transform_indices = @transform_4, window_bounds = array<i64: 16, 96>}]} {
    %c0 = arith.constant 0 : index
    %c0_0 = arith.constant 0 : index
    %0 = vector.load %arg1[%c0, %c0_0] : memref<16x32xbf16, #tpu.memory_space<vmem>>, vector<16x32xbf16>
    %c0_1 = arith.constant 0 : index
    %c0_2 = arith.constant 0 : index
    %1 = vector.load %arg2[%c0_1, %c0_2] : memref<32x32xbf16, #tpu.memory_space<vmem>>, vector<32x32xbf16>
    %cst = arith.constant dense<0.000000e+00> : vector<16x32xf32>
    %2 = tpu.matmul %0, %1, %cst {dimension_numbers = #tpu.dot_dimension_numbers<[1], [0], [0], [1], [0, 0, 1, 1], [], []>} : vector<16x32xbf16>, vector<32x32xbf16>, vector<16x32xf32> -> vector<16x32xf32>
    %3 = arith.truncf %2 : vector<16x32xf32> to vector<16x32xbf16>
    %c0_3 = arith.constant 0 : index
    %c0_4 = arith.constant 0 : index
    %4 = vector.load %arg4[%c0_3, %c0_4] : memref<16x32xbf16, #tpu.memory_space<vmem>>, vector<16x32xbf16>
    tpu.vector_store %arg4[%c0_3, %c0_4], %3 {strides = array<i32>} : memref<16x32xbf16, #tpu.memory_space<vmem>>, vector<16x32xbf16>,
    %c0_5 = arith.constant 0 : index
    %c0_6 = arith.constant 0 : index
    %5 = vector.load %arg3[%c0_5, %c0_6] : memref<32x96xbf16, #tpu.memory_space<vmem>>, vector<32x96xbf16>
    %cst_7 = arith.constant dense<0.000000e+00> : vector<16x96xf32>
    %6 = tpu.matmul %0, %5, %cst_7 {dimension_numbers = #tpu.dot_dimension_numbers<[1], [0], [0], [1], [0, 0, 1, 1], [], []>} : vector<16x32xbf16>, vector<32x96xbf16>, vector<16x96xf32> -> vector<16x96xf32>
    %7 = arith.truncf %6 : vector<16x96xf32> to vector<16x96xbf16>
    %c0_8 = arith.constant 0 : index
    %c0_9 = arith.constant 0 : index
    %8 = vector.load %arg5[%c0_8, %c0_9] : memref<16x96xbf16, #tpu.memory_space<vmem>>, vector<16x96xbf16>
    tpu.vector_store %arg5[%c0_8, %c0_9], %7 {strides = array<i32>} : memref<16x96xbf16, #tpu.memory_space<vmem>>, vector<16x96xbf16>,
    return
  }
  func.func @transform_0(%arg0: i32) -> (i32, i32) {
    %c0_i32 = arith.constant 0 : i32
    %c0_i32_0 = arith.constant 0 : i32
    return %arg0, %c0_i32 : i32, i32
  }
  func.func @transform_1(%arg0: i32) -> (i32, i32) {
    %c0_i32 = arith.constant 0 : i32
    %c0_i32_0 = arith.constant 0 : i32
    %c0_i32_1 = arith.constant 0 : i32
    return %c0_i32, %c0_i32_0 : i32, i32
  }
  func.func @transform_2(%arg0: i32) -> (i32, i32) {
    %c0_i32 = arith.constant 0 : i32
    %c0_i32_0 = arith.constant 0 : i32
    %c0_i32_1 = arith.constant 0 : i32
    return %c0_i32, %c0_i32_0 : i32, i32
  }
  func.func @transform_3(%arg0: i32) -> (i32, i32) {
    %c0_i32 = arith.constant 0 : i32
    %c0_i32_0 = arith.constant 0 : i32
    return %arg0, %c0_i32 : i32, i32
  }
  func.func @transform_4(%arg0: i32) -> (i32, i32) {
    %c0_i32 = arith.constant 0 : i32
    %c0_i32_0 = arith.constant 0 : i32
    return %arg0, %c0_i32 : i32, i32
  }
}

</mosaic_0001>

<bundles_post_ra>
// kernel: tpu_custom_call.1
= control target key start
LH: loop header
LB: loop body
LE: loop exit
PB: predicated region body
PF: predicated region fallthrough
CT: control target
= control target key end

     0   :  { %10 = vsyncpa [#allocation3], 0  ;;  %s413_s0 = inlined_call_operand.hbm [shape: bf16[16,32], index: 0, kind: input, shape index: {}]   ;;  %s414_s1 = inlined_call_operand.hbm [shape: bf16[32,32], index: 1, kind: input, shape index: {}]   ;;  %s415_s2 = inlined_call_operand.hbm [shape: bf16[32,96], index: 2, kind: input, shape index: {}]   ;;  %s416_s3 = inlined_call_operand.hbm [shape: bf16[16,32], index: 3, kind: output, shape index: {0}]   ;;  %s417_s4 = inlined_call_operand.hbm [shape: bf16[16,96], index: 4, kind: output, shape index: {1}]  }
   0x1   :  { %11 = vsyncpa [#allocation6], 0 }
   0x2   :  { %12 = vsyncpa [#allocation4], 0 }
   0x3   :  { %13 = vsyncpa [#allocation10], 0  ;;  %s31_s17 = sshll.u32 %s414_s1, 4  ;;  %s347_s18 = smov [#allocation5]   ;;  %s32_s17 = int_to_ptr.hbm [resolvable:$true] %s31_s17 }
   0x4   :  { %s33_s19 = sshll.u32 %s347_s18, 4  ;;  %s18_s22 = sshll.u32 %s413_s0, 4  ;;  %s34_s19 = int_to_ptr.vmem [resolvable:$true] %s33_s19  ;;  %s19_s22 = int_to_ptr.hbm [resolvable:$true] %s18_s22 }
   0x5   :  { %s348_s23 = smov 64   ;;  %s349_s24 = smov 4  }
   0x6   :  { %39 = dma.hbm_to_vmem [thread:$0]  %s32_s17, 256, %s34_s19, [#allocation6], %s348_s23, %s348_s23, %s349_s24  }
   0x7   :  { %s350_s25 = smov [#allocation2]   ;;  %s44_s1 = sshll.u32 %s415_s2, 4  ;;  %s45_s1 = int_to_ptr.hbm [resolvable:$true] %s44_s1 }
   0x8   :  { %s20_s26 = sshll.u32 %s350_s25, 4  ;;  %s351_s0 = smov [#allocation7]   ;;  %s21_s26 = int_to_ptr.vmem [resolvable:$true] %s20_s26 }
   0x9   :  { %26 = dma.hbm_to_vmem [thread:$0]  %s19_s22, 128, %s21_s26, [#allocation3], %s348_s23, %s348_s23, %s349_s24  }
   0xa   :  { %s46_s29 = sshll.u32 %s351_s0, 4  ;;  %s47_s29 = int_to_ptr.vmem [resolvable:$true] %s46_s29 }
   0xb   :  { %52 = dma.hbm_to_vmem [thread:$0]  %s45_s1, 256, %s47_s29, [#allocation6], %s348_s23, %s348_s23, %s349_s24  }
   0xc   :  { %339 = dma.done.wait [#allocation3], 128  }
   0xd   :  { %340 = vsyncadd [#allocation3], 4294967168 }
   0xe   :  { %341 = dma.done.wait [#allocation6], 512  }
   0xf   :  { %342 = vsyncadd [#allocation6], 4294966784  ;;  %v209_v0 = vld [vmem:[#allocation5 + $0x8] sm:$0xff]  ;;  %v211_v1 = vld [vmem:[#allocation7 + $0x8] sm:$0xff]  ;;  %vm89_vm0 = vcmask 261120   ;;  %vm109_vm1 = vcmask 257024  }
  0x10   :  { %99 = vmatpush.bf16.msra.mxu0 %v209_v0  ;;  %134 = vmatpush.bf16.msra.mxu1 %v211_v1  ;;  %v208_v2 = vld [vmem:[#allocation5] sm:$0xff]  ;;  %v210_v3 = vld [vmem:[#allocation7] sm:$0xff]  ;;  %v207_v4 = vld [vmem:[#allocation2] sm:$0xff]  ;;  %vm144_vm2 = vcmask 781312   ;;  %s352_s2 = smov [#allocation8]   ;;  %s153_s7 = sshll.u32 %s416_s3, 4  ;;  %s154_s7 = int_to_ptr.hbm [resolvable:$true] %s153_s7 }
  0x11   :  { %s151_s30 = sshll.u32 %s352_s2, 4  ;;  %s353_s8 = smov [#allocation9]   ;;  %s152_s30 = int_to_ptr.vmem [resolvable:$true] %s151_s30 }
  0x12   :  { %s164_s9 = sshll.u32 %s353_s8, 4  ;;  %s166_s12 = sshll.u32 %s417_s4, 4  ;;  %s165_s9 = int_to_ptr.vmem [resolvable:$true] %s164_s9  ;;  %s167_s12 = int_to_ptr.hbm [resolvable:$true] %s166_s12 }
  0x14   :  { %100 = vmatpush.bf16.msra.mxu0 %v208_v2  ;;  %135 = vmatpush.bf16.msra.mxu1 %v210_v3 }
  0x17   :  { %197 = vmatmul.msk.bf16.vlgmr.msra.gmra.mxu0 %vm89_vm0, %v207_v4  ;;  %206 = vmatmul.msk.bf16.vlgmr.msra.gmra.mxu1 %vm89_vm0, %v207_v4 }
  0x94   :  { %v102_v5 = vpop.f32.mrf.mxu0  ;;  %v137_v6 = vpop.f32.mrf.mxu1 }
  0x95   :  { %v107_v7 = vpack.c.bf16 %v102_v5, %v102_v5  ;;  %v142_v8 = vpack.c.bf16 %v137_v6, %v137_v6 }
  0x97   :  { %110 = vst.msk [vmem:[#allocation8] sm:$0xf] %vm109_vm1, %v107_v7 }
  0x98   :  { %145 = vst.msk [vmem:[#allocation9] sm:$0xf] %vm144_vm2, %v142_v8 }
  0x9c   :  { %v104_v9 = vpop.f32.mrf.mxu0  ;;  %v139_v10 = vpop.f32.mrf.mxu1 }
  0x9d   :  { %v108_v11 = vpack.c.bf16 %v104_v9, %v104_v9  ;;  %v143_v12 = vpack.c.bf16 %v139_v10, %v139_v10 }
  0x9f   :  { %111 = vst.msk [vmem:[#allocation8 + $0x4] sm:$0xf] %vm109_vm1, %v108_v11 }
  0xa0   :  { %146 = vst.msk [vmem:[#allocation9 + $0x4] sm:$0xf] %vm144_vm2, %v143_v12  ;;  %159 = dma.vmem_to_hbm [thread:$0]  %s152_s30, 128, %s154_s7, [#allocation4], %s348_s23, %s348_s23, %s349_s24  }
  0xa1   :  { %172 = dma.vmem_to_hbm [thread:$0]  %s165_s9, 128, %s167_s12, [#allocation10], %s348_s23, %s348_s23, %s349_s24  }
  0xa2   :  { %343 = dma.done.wait [#allocation4], 128  }
  0xa3   :  { %344 = vsyncadd [#allocation4], 4294967168 }
  0xa4   :  { %345 = dma.done.wait [#allocation10], 128  }
  0xa5   :  { %346 = vsyncadd [#allocation10], 4294967168 }
  0xa6   :  { %181 = vsyncpa [#allocation3], 1 }
  0xa7   :  { %182 = vsyncpa [#allocation6], 1 }
  0xa8   :  { %183 = vsyncpa [#allocation4], 1 }
  0xa9   :  { %184 = vsyncpa [#allocation10], 1 }

</bundles_post_ra>
